<compile_context>
chip_gen: v6e
topology: v6e:2x2x1
jax: 0.10.0
libtpu: 0.0.40
codegen_flags: <defaults>
</compile_context>

<pallas_src>
import functools

import jax
import jax.numpy as jnp
from jax import lax
from jax.experimental import pallas as pl
from jax.experimental.pallas import tpu as pltpu


# ---------------------------------------------------------------------------
# Fused forward kernel (single invocation, no grid; everything fits in VMEM)
# ---------------------------------------------------------------------------
# wvec row layout (lane-padded to 128):
_R_GNS, _R_GNT, _R_PW, _R_PB, _R_EWU, _R_EWY, _R_EB, _R_D1WU, _R_D1WY, _R_D1B, _R_D2B = range(11)


def _clear_fused_kernel(x_ref, adj_ref, u_ref, y_ref,
                        wmat_ref, wvec_ref, wdec3_ref, out_ref,
                        *, h_dim, z_dim):
    x = x_ref[...]                       # (B, N, F)
    adj = adj_ref[...]                   # (B, N, N)
    u = u_ref[...]                       # (B, 1)
    y = y_ref[...]                       # (B, 1)
    B, N, F = x.shape
    H, Z = h_dim, z_dim
    NN = N * N
    NF = N * F

    # static row offsets inside the packed weight slab
    r_gcn = 0
    r_enc = r_gcn + F
    r_d1 = r_enc + H
    r_d2 = r_d1 + Z

    # ---------------- DenseGCNConv (batched over B) ---------------------------
    # self-loop mask from a single (N,N) iota compare, broadcast over B
    eye = (lax.broadcasted_iota(jnp.int32, (N, N), 0)
           == lax.broadcasted_iota(jnp.int32, (N, N), 1))
    adj_sl = jnp.where(eye[None, :, :], 1.0, adj)            # force self loops
    deg = jnp.sum(adj_sl, axis=-1, keepdims=True)            # (B, N, 1)
    dis = lax.rsqrt(jnp.maximum(deg, 1.0))                   # deg^{-1/2}, clamp like PyG

    gcn_w = wmat_ref[r_gcn:r_gcn + F, 0:H]                   # (F, H)
    xw = jnp.dot(x.reshape(B * N, F), gcn_w,
                 preferred_element_type=jnp.float32).reshape(B, N, H)
    prop = dis * jnp.einsum('bij,bjh->bih', adj_sl, dis * xw,
                            preferred_element_type=jnp.float32)

    # sum-pool over nodes ('mean' in the reference is actually a sum);
    # GCN bias + eval graph_norm folded into gn_scale/gn_shift on the host.
    graph_rep = (jnp.sum(prop, axis=1) * wvec_ref[_R_GNS:_R_GNS + 1, 0:H]
                 + wvec_ref[_R_GNT:_R_GNT + 1, 0:H])          # (B, H)

    # ---------------- prior heads (packed [mean | var]) -----------------------
    prior_lin = (u * wvec_ref[_R_PW:_R_PW + 1, 0:2 * Z]
                 + wvec_ref[_R_PB:_R_PB + 1, 0:2 * Z])         # (B, 2Z)
    z_u_mu = prior_lin[:, :Z]
    z_u_logvar = jax.nn.sigmoid(prior_lin[:, Z:])

    # ---------------- encoder heads (packed, concat folded into row splits) ---
    enc_lin = (jnp.dot(graph_rep, wmat_ref[r_enc:r_enc + H, 0:2 * Z],
                       preferred_element_type=jnp.float32)
               + u * wvec_ref[_R_EWU:_R_EWU + 1, 0:2 * Z]
               + y * wvec_ref[_R_EWY:_R_EWY + 1, 0:2 * Z]
               + wvec_ref[_R_EB:_R_EB + 1, 0:2 * Z])           # (B, 2Z)
    enc_relu = jnp.maximum(enc_lin, 0.0)
    z_mu = enc_relu[:, :Z]
    z_logvar = jax.nn.sigmoid(enc_relu[:, Z:])

    z = z_mu                                                   # reparametrize (eval)

    # ---------------- merged decoders (a | x), block-diagonal packing ----------
    h1 = jnp.maximum(
        jnp.dot(z, wmat_ref[r_d1:r_d1 + Z, 0:2 * H],
                preferred_element_type=jnp.float32)
        + u * wvec_ref[_R_D1WU:_R_D1WU + 1, 0:2 * H]           # u only feeds decoder_a half
        + y * wvec_ref[_R_D1WY:_R_D1WY + 1, 0:2 * H]
        + wvec_ref[_R_D1B:_R_D1B + 1, 0:2 * H], 0.0)           # (B, 2H)
    h2 = jnp.maximum(
        jnp.dot(h1, wmat_ref[r_d2:r_d2 + 2 * H, 0:2 * H],
                preferred_element_type=jnp.float32)
        + wvec_ref[_R_D2B:_R_D2B + 1, 0:2 * H], 0.0)           # (B, 2H)
    dec = (jnp.dot(h2, wdec3_ref[0:2 * H, :],
                   preferred_element_type=jnp.float32)
           + wdec3_ref[2 * H:2 * H + 1, :])                    # (B, NN + NF)
    adj_flat = jax.nn.sigmoid(dec[:, :NN])
    x_flat = dec[:, NN:NN + NF]

    # ---------------- single lane-dense store ---------------------------------
    used = 4 * Z + NN + NF
    pad = out_ref.shape[1] - used
    pieces = [z_mu, z_logvar, z_u_mu, z_u_logvar, adj_flat, x_flat]
    if pad > 0:
        pieces.append(jnp.zeros((B, pad), jnp.float32))
    out_ref[...] = jnp.concatenate(pieces, axis=1)


# ---------------------------------------------------------------------------
# Wrapper: one pallas_call, slice the lane-dense slab afterwards
# ---------------------------------------------------------------------------
def clear_forward(packed, features, causality, adj, y_cf,
                  *, n_nodes, x_dim, h_dim, z_dim):
    B = features.shape[0]
    nn_ = n_nodes * n_nodes
    nf = n_nodes * x_dim
    used = 4 * z_dim + nn_ + nf
    slab_w = max(128, ((used + 127) // 128) * 128)            # lane-dense output width

    kernel = functools.partial(_clear_fused_kernel, h_dim=h_dim, z_dim=z_dim)

    flops = 2 * B * (n_nodes * x_dim * h_dim                  # X @ W
                     + n_nodes * n_nodes * h_dim              # A @ (XW)
                     + h_dim * 2 * z_dim                      # encoder heads
                     + z_dim * 2 * h_dim                      # decoder layer 1
                     + 4 * h_dim * h_dim                      # decoder layer 2
                     + 2 * h_dim * (nn_ + nf))                # decoder layer 3
    transcendentals = B * (n_nodes + 3 * z_dim + nn_)         # rsqrt + sigmoids
    bytes_accessed = 4 * (features.size + adj.size + causality.size + y_cf.size
                          + packed["wmat"].size + packed["wvec"].size
                          + packed["wdec3"].size + B * slab_w)

    vmem_spec = pl.BlockSpec(memory_space=pltpu.MemorySpace.VMEM)

    slab = pl.pallas_call(
        kernel,
        out_shape=jax.ShapeDtypeStruct((B, slab_w), jnp.float32),
        in_specs=[vmem_spec] * 7,
        out_specs=vmem_spec,
        cost_estimate=pl.CostEstimate(flops=flops,
                                      transcendentals=transcendentals,
                                      bytes_accessed=bytes_accessed),
    )(features, adj, causality, y_cf,
      packed["wmat"], packed["wvec"], packed["wdec3"])

    o = 0
    z_mu = slab[:, o:o + z_dim]; o += z_dim
    z_logvar = slab[:, o:o + z_dim]; o += z_dim
    z_u_mu = slab[:, o:o + z_dim]; o += z_dim
    z_u_logvar = slab[:, o:o + z_dim]; o += z_dim
    adj_reconst = slab[:, o:o + nn_].reshape(B, n_nodes, n_nodes); o += nn_
    features_reconst = slab[:, o:o + nf].reshape(B, n_nodes, x_dim)

    return {
        "z_mu": z_mu,
        "z_logvar": z_logvar,
        "adj_permuted": adj,
        "features_permuted": features,
        "adj_reconst": adj_reconst,
        "features_reconst": features_reconst,
        "z_u_mu": z_u_mu,
        "z_u_logvar": z_u_logvar,
    }


# ---------------------------------------------------------------------------
# Parameter construction (raw, matching the PyTorch module) + host-side packing
# ---------------------------------------------------------------------------
def _linear_params(key, din, dout, scale=0.1):
    kw, kb = jax.random.split(key)
    w = jax.random.normal(kw, (din, dout), jnp.float32) * scale
    b = (jax.random.normal(kb, (dout,), jnp.float32) * scale).reshape(1, dout)
    return w, b


def _bn_eval_affine(dim, eps=1e-5):
    # PyTorch BatchNorm1d defaults: gamma=1, beta=0, running_mean=0, running_var=1
    gamma = jnp.ones((dim,), jnp.float32)
    beta = jnp.zeros((dim,), jnp.float32)
    mean = jnp.zeros((dim,), jnp.float32)
    var = jnp.ones((dim,), jnp.float32)
    scale = gamma / jnp.sqrt(var + eps)
    shift = beta - mean * scale
    return scale.reshape(1, dim), shift.reshape(1, dim)


def _fold_linear_bn(w, b, s, t):
    # eval BN after Linear:  (xW + b)*s + t == x(W*s) + (b*s + t)
    return w * s, b * s + t


def init_raw_params(key, feature_dim, h_dim, z_dim, n_nodes):
    ks = jax.random.split(key, 12)
    p = {}
    p["gcn_w"], p["gcn_b"] = _linear_params(ks[0], feature_dim, h_dim)
    p["gn_s"], p["gn_t"] = _bn_eval_affine(h_dim)
    p["pm_w"], p["pm_b"] = _linear_params(ks[1], 1, z_dim)
    p["pv_w"], p["pv_b"] = _linear_params(ks[2], 1, z_dim)
    p["em_w"], p["em_b"] = _linear_params(ks[3], h_dim + 2, z_dim)
    p["em_s"], p["em_t"] = _bn_eval_affine(z_dim)
    p["ev_w"], p["ev_b"] = _linear_params(ks[4], h_dim + 2, z_dim)
    p["ev_s"], p["ev_t"] = _bn_eval_affine(z_dim)
    p["dx1_w"], p["dx1_b"] = _linear_params(ks[5], z_dim + 1, h_dim)
    p["dx1_s"], p["dx1_t"] = _bn_eval_affine(h_dim)
    p["dx2_w"], p["dx2_b"] = _linear_params(ks[6], h_dim, h_dim)
    p["dx2_s"], p["dx2_t"] = _bn_eval_affine(h_dim)
    p["dx3_w"], p["dx3_b"] = _linear_params(ks[7], h_dim, n_nodes * feature_dim)
    p["da1_w"], p["da1_b"] = _linear_params(ks[8], z_dim + 2, h_dim)
    p["da1_s"], p["da1_t"] = _bn_eval_affine(h_dim)
    p["da2_w"], p["da2_b"] = _linear_params(ks[9], h_dim, h_dim)
    p["da2_s"], p["da2_t"] = _bn_eval_affine(h_dim)
    p["da3_w"], p["da3_b"] = _linear_params(ks[10], h_dim, n_nodes * n_nodes)
    return p


def pack_params(raw, n_nodes, x_dim):
    """Fold eval-BN into Linears and pack everything into 3 lane-dense slabs."""
    f = raw["gcn_w"].shape[0]
    h = raw["gcn_w"].shape[1]
    z = raw["pm_w"].shape[1]
    nn_ = n_nodes * n_nodes
    nf = n_nodes * x_dim
    LANES = 128
    assert h <= LANES and 2 * z <= LANES and 2 * h <= LANES, "pack_params assumes 2H,2Z <= 128"

    # fold BN into adjacent Linears
    em_w, em_b = _fold_linear_bn(raw["em_w"], raw["em_b"], raw["em_s"], raw["em_t"])
    ev_w, ev_b = _fold_linear_bn(raw["ev_w"], raw["ev_b"], raw["ev_s"], raw["ev_t"])
    da1_w, da1_b = _fold_linear_bn(raw["da1_w"], raw["da1_b"], raw["da1_s"], raw["da1_t"])
    da2_w, da2_b = _fold_linear_bn(raw["da2_w"], raw["da2_b"], raw["da2_s"], raw["da2_t"])
    dx1_w, dx1_b = _fold_linear_bn(raw["dx1_w"], raw["dx1_b"], raw["dx1_s"], raw["dx1_t"])
    dx2_w, dx2_b = _fold_linear_bn(raw["dx2_w"], raw["dx2_b"], raw["dx2_s"], raw["dx2_t"])

    def pad_lanes(a):
        return jnp.pad(a, ((0, 0), (0, LANES - a.shape[1])))

    # --- wmat: all weight matrices stacked along rows, padded to 128 lanes ---
    wmat = jnp.concatenate([
        pad_lanes(raw["gcn_w"]),                                           # rows [0, F)
        pad_lanes(jnp.concatenate([em_w[:h], ev_w[:h]], axis=1)),          # rows [F, F+H)
        pad_lanes(jnp.concatenate([da1_w[:z], dx1_w[:z]], axis=1)),        # rows [F+H, F+H+Z)
        pad_lanes(jnp.block([[da2_w, jnp.zeros((h, h), jnp.float32)],
                             [jnp.zeros((h, h), jnp.float32), dx2_w]])),   # rows [F+H+Z, F+H+Z+2H)
    ], axis=0)

    # --- wvec: one-row vectors / biases / rank-1 concat rows ---
    gn_scale = raw["gn_s"]
    gn_shift = n_nodes * raw["gcn_b"] * raw["gn_s"] + raw["gn_t"]   # GCN bias folded
    p_w = jnp.concatenate([raw["pm_w"], raw["pv_w"]], axis=1)
    p_b = jnp.concatenate([raw["pm_b"], raw["pv_b"]], axis=1)
    e_wu = jnp.concatenate([em_w[h:h + 1], ev_w[h:h + 1]], axis=1)
    e_wy = jnp.concatenate([em_w[h + 1:h + 2], ev_w[h + 1:h + 2]], axis=1)
    e_b = jnp.concatenate([em_b, ev_b], axis=1)
    d1_wu = jnp.concatenate([da1_w[z:z + 1], jnp.zeros((1, h), jnp.float32)], axis=1)
    d1_wy = jnp.concatenate([da1_w[z + 1:z + 2], dx1_w[z:z + 1]], axis=1)
    d1_b = jnp.concatenate([da1_b, dx1_b], axis=1)
    d2_b = jnp.concatenate([da2_b, dx2_b], axis=1)

    rows = [gn_scale, gn_shift, p_w, p_b, e_wu, e_wy, e_b, d1_wu, d1_wy, d1_b, d2_b]
    wvec = jnp.concatenate([pad_lanes(r.reshape(1, -1)) for r in rows], axis=0)
    wvec = jnp.pad(wvec, ((0, 16 - wvec.shape[0]), (0, 0)))    # (16, 128)

    # --- wdec3: block-diagonal decoder layer-3 + bias row ---
    d3_w = jnp.block([[raw["da3_w"], jnp.zeros((h, nf), jnp.float32)],
                      [jnp.zeros((h, nn_), jnp.float32), raw["dx3_w"]]])   # (2H, NN+NF)
    d3_b = jnp.concatenate([raw["da3_b"], raw["dx3_b"]], axis=1)           # (1, NN+NF)
    wdec3 = jnp.concatenate([d3_w, d3_b], axis=0)                          # (2H+1, NN+NF)

    return {"wmat": wmat, "wvec": wvec, "wdec3": wdec3}


# ---------------------------------------------------------------------------
# Pure-JAX eval-mode reference (unfused, unfolded) for correctness checking
# ---------------------------------------------------------------------------
def clear_forward_ref(p, features, causality, adj, y_cf, *, n_nodes, x_dim):
    B, N, _ = features.shape
    eye = jnp.eye(N, dtype=features.dtype)[None]
    adj_sl = jnp.where(eye > 0, 1.0, adj)
    deg = jnp.sum(adj_sl, axis=-1, keepdims=True)
    dis = lax.rsqrt(jnp.maximum(deg, 1.0))
    xw = jnp.einsum('bnf,fh->bnh', features, p["gcn_w"])
    gcn_out = dis * jnp.einsum('bij,bjh->bih', adj_sl, dis * xw) + p["gcn_b"]
    pooled = jnp.sum(gcn_out, axis=1)

    def bn(x, s, t):
        return x * s + t

    graph_rep = bn(pooled, p["gn_s"], p["gn_t"])
    enc_in = jnp.concatenate([graph_rep, causality, y_cf], axis=1)
    z_mu = jnp.maximum(bn(enc_in @ p["em_w"] + p["em_b"], p["em_s"], p["em_t"]), 0.0)
    z_logvar = jax.nn.sigmoid(
        jnp.maximum(bn(enc_in @ p["ev_w"] + p["ev_b"], p["ev_s"], p["ev_t"]), 0.0))
    z_u_mu = causality @ p["pm_w"] + p["pm_b"]
    z_u_logvar = jax.nn.sigmoid(causality @ p["pv_w"] + p["pv_b"])
    z = z_mu
    a_in = jnp.concatenate([z, causality, y_cf], axis=1)
    h = jnp.maximum(bn(a_in @ p["da1_w"] + p["da1_b"], p["da1_s"], p["da1_t"]), 0.0)
    h = jnp.maximum(bn(h @ p["da2_w"] + p["da2_b"], p["da2_s"], p["da2_t"]), 0.0)
    adj_reconst = jax.nn.sigmoid(h @ p["da3_w"] + p["da3_b"]).reshape(B, n_nodes, n_nodes)
    x_in = jnp.concatenate([z, y_cf], axis=1)
    h = jnp.maximum(bn(x_in @ p["dx1_w"] + p["dx1_b"], p["dx1_s"], p["dx1_t"]), 0.0)
    h = jnp.maximum(bn(h @ p["dx2_w"] + p["dx2_b"], p["dx2_s"], p["dx2_t"]), 0.0)
    features_reconst = (h @ p["dx3_w"] + p["dx3_b"]).reshape(B, n_nodes, x_dim)
    return {
        "z_mu": z_mu, "z_logvar": z_logvar,
        "z_u_mu": z_u_mu, "z_u_logvar": z_u_logvar,
        "adj_reconst": adj_reconst, "features_reconst": features_reconst,
    }


if __name__ == "__main__":
    B, N_NODES, X_DIM, H_DIM, Z_DIM = 4, 10, 8, 16, 16

    key = jax.random.PRNGKey(0)
    k_par, k_x, k_a, k_u, k_y = jax.random.split(key, 5)

    raw = init_raw_params(k_par, X_DIM, H_DIM, Z_DIM, N_NODES)
    packed = pack_params(raw, N_NODES, X_DIM)

    features = jax.random.normal(k_x, (B, N_NODES, X_DIM), jnp.float32)
    adj = (jax.random.uniform(k_a, (B, N_NODES, N_NODES)) > 0.5).astype(jnp.float32)
    adj = jnp.maximum(adj, jnp.transpose(adj, (0, 2, 1)))    # symmetric 0/1 adjacency
    causality = jax.random.uniform(k_u, (B, 1), jnp.float32)
    y_cf = (jax.random.uniform(k_y, (B, 1)) > 0.5).astype(jnp.float32)

    fwd = jax.jit(functools.partial(clear_forward, n_nodes=N_NODES, x_dim=X_DIM,
                                    h_dim=H_DIM, z_dim=Z_DIM))
    out = fwd(packed, features, causality, adj, y_cf)
    jax.block_until_ready(out)

    # shape sanity checks
    assert out["z_mu"].shape == (B, Z_DIM)
    assert out["z_logvar"].shape == (B, Z_DIM)
    assert out["adj_reconst"].shape == (B, N_NODES, N_NODES)
    assert out["features_reconst"].shape == (B, N_NODES, X_DIM)
    assert out["z_u_mu"].shape == (B, Z_DIM)
    assert out["z_u_logvar"].shape == (B, Z_DIM)

    # numerical check against unfused / unfolded pure-JAX eval reference
    ref = clear_forward_ref(raw, features, causality, adj, y_cf,
                            n_nodes=N_NODES, x_dim=X_DIM)
    for name in ("z_mu", "z_logvar", "z_u_mu", "z_u_logvar",
                 "adj_reconst", "features_reconst"):
        assert jnp.allclose(out[name], ref[name], atol=1e-4, rtol=1e-4), name

    print("KERNEL_OK")
</pallas_src>

<mosaic_0001>
module attributes {stable_mosaic.version = 11 : i64} {
  func.func @_clear_fused_kernel(%arg0: memref<4x10x8xf32, #tpu.memory_space<vmem>>, %arg1: memref<4x10x10xf32, #tpu.memory_space<vmem>>, %arg2: memref<4x1xf32, #tpu.memory_space<vmem>>, %arg3: memref<4x1xf32, #tpu.memory_space<vmem>>, %arg4: memref<72x128xf32, #tpu.memory_space<vmem>>, %arg5: memref<16x128xf32, #tpu.memory_space<vmem>>, %arg6: memref<33x180xf32, #tpu.memory_space<vmem>>, %arg7: memref<4x256xf32, #tpu.memory_space<vmem>>) attributes {dimension_semantics = [], scalar_prefetch = 0 : i64, scratch_operands = 0 : i64, tpu.core_type = #tpu.core_type<tc>} {
    %c0 = arith.constant 0 : index
    %c0_0 = arith.constant 0 : index
    %c0_1 = arith.constant 0 : index
    %0 = vector.load %arg0[%c0, %c0_0, %c0_1] : memref<4x10x8xf32, #tpu.memory_space<vmem>>, vector<4x10x8xf32>
    %c0_2 = arith.constant 0 : index
    %c0_3 = arith.constant 0 : index
    %c0_4 = arith.constant 0 : index
    %1 = vector.load %arg1[%c0_2, %c0_3, %c0_4] : memref<4x10x10xf32, #tpu.memory_space<vmem>>, vector<4x10x10xf32>
    %c0_5 = arith.constant 0 : index
    %c0_6 = arith.constant 0 : index
    %2 = vector.load %arg2[%c0_5, %c0_6] : memref<4x1xf32, #tpu.memory_space<vmem>>, vector<4x1xf32>
    %c0_7 = arith.constant 0 : index
    %c0_8 = arith.constant 0 : index
    %3 = vector.load %arg3[%c0_7, %c0_8] : memref<4x1xf32, #tpu.memory_space<vmem>>, vector<4x1xf32>
    %4 = tpu.iota {dimensions = array<i32: 0>} : vector<10x10xi32>
    %5 = tpu.iota {dimensions = array<i32: 1>} : vector<10x10xi32>
    %6 = arith.cmpi eq, %4, %5 : vector<10x10xi32>
    %7 = vector.shape_cast %6 : vector<10x10xi1> to vector<1x10x10xi1>
    %cst = arith.constant 1.000000e+00 : f32
    %8 = vector.shape_cast %7 : vector<1x10x10xi1> to vector<1x10x10xi1>
    %9 = vector.broadcast %8 : vector<1x10x10xi1> to vector<4x10x10xi1>
    %10 = vector.broadcast %cst : f32 to vector<4x10x10xf32>
    %11 = arith.select %9, %10, %1 : vector<4x10x10xi1>, vector<4x10x10xf32>
    %cst_9 = arith.constant dense<0.000000e+00> : vector<4x10xf32>
    %12 = vector.multi_reduction <add>, %11, %cst_9 [2] : vector<4x10x10xf32> to vector<4x10xf32>
    %13 = vector.shape_cast %12 : vector<4x10xf32> to vector<4x10x1xf32>
    %cst_10 = arith.constant 1.000000e+00 : f32
    %14 = vector.broadcast %cst_10 : f32 to vector<4x10x1xf32>
    %15 = arith.maximumf %13, %14 : vector<4x10x1xf32>
    %16 = math.rsqrt %15 : vector<4x10x1xf32>
    %c0_11 = arith.constant 0 : index
    %c0_12 = arith.constant 0 : index
    %17 = vector.load %arg4[%c0_11, %c0_12] : memref<72x128xf32, #tpu.memory_space<vmem>>, vector<8x16xf32>
    %18 = vector.shape_cast %0 : vector<4x10x8xf32> to vector<40x8xf32>
    %cst_13 = arith.constant dense<0.000000e+00> : vector<40x16xf32>
    %19 = tpu.matmul %18, %17, %cst_13 {dimension_numbers = #tpu.dot_dimension_numbers<[1], [0], [0], [1], [0, 0, 1, 1], [], []>} : vector<40x8xf32>, vector<8x16xf32>, vector<40x16xf32> -> vector<40x16xf32>
    %20 = vector.shape_cast %19 : vector<40x16xf32> to vector<4x10x16xf32>
    %21 = vector.broadcast %16 : vector<4x10x1xf32> to vector<4x10x16xf32>
    %22 = arith.mulf %21, %20 : vector<4x10x16xf32>
    "tpu.trace_start"() <{level = 10 : i32, message = "bij,bjh->bih"}> : () -> ()
    %cst_14 = arith.constant dense<0.000000e+00> : vector<4x10x16xf32>
    %23 = tpu.matmul %11, %22, %cst_14 {dimension_numbers = #tpu.dot_dimension_numbers<[2], [1], [1], [2], [0, 0, 0, 1, 1, 2], [0], [0]>} : vector<4x10x10xf32>, vector<4x10x16xf32>, vector<4x10x16xf32> -> vector<4x10x16xf32>
    "tpu.trace_stop"() : () -> ()
    %24 = vector.broadcast %16 : vector<4x10x1xf32> to vector<4x10x16xf32>
    %25 = arith.mulf %24, %23 : vector<4x10x16xf32>
    %cst_15 = arith.constant dense<0.000000e+00> : vector<4x16xf32>
    %26 = vector.multi_reduction <add>, %25, %cst_15 [1] : vector<4x10x16xf32> to vector<4x16xf32>
    %c0_16 = arith.constant 0 : index
    %c0_17 = arith.constant 0 : index
    %27 = vector.load %arg5[%c0_16, %c0_17] : memref<16x128xf32, #tpu.memory_space<vmem>>, vector<1x16xf32>
    %28 = vector.broadcast %27 : vector<1x16xf32> to vector<4x16xf32>
    %29 = arith.mulf %26, %28 : vector<4x16xf32>
    %c1 = arith.constant 1 : index
    %c0_18 = arith.constant 0 : index
    %30 = vector.load %arg5[%c1, %c0_18] : memref<16x128xf32, #tpu.memory_space<vmem>>, vector<1x16xf32>
    %31 = vector.broadcast %30 : vector<1x16xf32> to vector<4x16xf32>
    %32 = arith.addf %29, %31 : vector<4x16xf32>
    %c2 = arith.constant 2 : index
    %c0_19 = arith.constant 0 : index
    %33 = vector.load %arg5[%c2, %c0_19] : memref<16x128xf32, #tpu.memory_space<vmem>>, vector<1x32xf32>
    %34 = vector.broadcast %2 : vector<4x1xf32> to vector<4x32xf32>
    %35 = vector.broadcast %33 : vector<1x32xf32> to vector<4x32xf32>
    %36 = arith.mulf %34, %35 : vector<4x32xf32>
    %c3 = arith.constant 3 : index
    %c0_20 = arith.constant 0 : index
    %37 = vector.load %arg5[%c3, %c0_20] : memref<16x128xf32, #tpu.memory_space<vmem>>, vector<1x32xf32>
    %38 = vector.broadcast %37 : vector<1x32xf32> to vector<4x32xf32>
    %39 = arith.addf %36, %38 : vector<4x32xf32>
    %40 = vector.extract_strided_slice %39 {offsets = [0, 0], sizes = [4, 16], strides = [1, 1]} : vector<4x32xf32> to vector<4x16xf32>
    %41 = vector.extract_strided_slice %39 {offsets = [0, 16], sizes = [4, 16], strides = [1, 1]} : vector<4x32xf32> to vector<4x16xf32>
    %42 = arith.negf %41 : vector<4x16xf32>
    %43 = math.exp %42 : vector<4x16xf32>
    %cst_21 = arith.constant 1.000000e+00 : f32
    %44 = vector.broadcast %cst_21 : f32 to vector<4x16xf32>
    %45 = arith.addf %44, %43 : vector<4x16xf32>
    %46 = arith.divf %44, %45 : vector<4x16xf32>
    %c8 = arith.constant 8 : index
    %c0_22 = arith.constant 0 : index
    %47 = vector.load %arg4[%c8, %c0_22] : memref<72x128xf32, #tpu.memory_space<vmem>>, vector<16x32xf32>
    %cst_23 = arith.constant dense<0.000000e+00> : vector<4x32xf32>
    %48 = tpu.matmul %32, %47, %cst_23 {dimension_numbers = #tpu.dot_dimension_numbers<[1], [0], [0], [1], [0, 0, 1, 1], [], []>} : vector<4x16xf32>, vector<16x32xf32>, vector<4x32xf32> -> vector<4x32xf32>
    %c4 = arith.constant 4 : index
    %c0_24 = arith.constant 0 : index
    %49 = vector.load %arg5[%c4, %c0_24] : memref<16x128xf32, #tpu.memory_space<vmem>>, vector<1x32xf32>
    %50 = vector.broadcast %2 : vector<4x1xf32> to vector<4x32xf32>
    %51 = vector.broadcast %49 : vector<1x32xf32> to vector<4x32xf32>
    %52 = arith.mulf %50, %51 : vector<4x32xf32>
    %53 = arith.addf %48, %52 : vector<4x32xf32>
    %c5 = arith.constant 5 : index
    %c0_25 = arith.constant 0 : index
    %54 = vector.load %arg5[%c5, %c0_25] : memref<16x128xf32, #tpu.memory_space<vmem>>, vector<1x32xf32>
    %55 = vector.broadcast %3 : vector<4x1xf32> to vector<4x32xf32>
    %56 = vector.broadcast %54 : vector<1x32xf32> to vector<4x32xf32>
    %57 = arith.mulf %55, %56 : vector<4x32xf32>
    %58 = arith.addf %53, %57 : vector<4x32xf32>
    %c6 = arith.constant 6 : index
    %c0_26 = arith.constant 0 : index
    %59 = vector.load %arg5[%c6, %c0_26] : memref<16x128xf32, #tpu.memory_space<vmem>>, vector<1x32xf32>
    %60 = vector.broadcast %59 : vector<1x32xf32> to vector<4x32xf32>
    %61 = arith.addf %58, %60 : vector<4x32xf32>
    %cst_27 = arith.constant 0.000000e+00 : f32
    %62 = vector.broadcast %cst_27 : f32 to vector<4x32xf32>
    %63 = arith.maximumf %61, %62 : vector<4x32xf32>
    %64 = vector.extract_strided_slice %63 {offsets = [0, 0], sizes = [4, 16], strides = [1, 1]} : vector<4x32xf32> to vector<4x16xf32>
    %65 = vector.extract_strided_slice %63 {offsets = [0, 16], sizes = [4, 16], strides = [1, 1]} : vector<4x32xf32> to vector<4x16xf32>
    %66 = arith.negf %65 : vector<4x16xf32>
    %67 = math.exp %66 : vector<4x16xf32>
    %cst_28 = arith.constant 1.000000e+00 : f32
    %68 = vector.broadcast %cst_28 : f32 to vector<4x16xf32>
    %69 = arith.addf %68, %67 : vector<4x16xf32>
    %70 = arith.divf %68, %69 : vector<4x16xf32>
    %c24 = arith.constant 24 : index
    %c0_29 = arith.constant 0 : index
    %71 = vector.load %arg4[%c24, %c0_29] : memref<72x128xf32, #tpu.memory_space<vmem>>, vector<16x32xf32>
    %cst_30 = arith.constant dense<0.000000e+00> : vector<4x32xf32>
    %72 = tpu.matmul %64, %71, %cst_30 {dimension_numbers = #tpu.dot_dimension_numbers<[1], [0], [0], [1], [0, 0, 1, 1], [], []>} : vector<4x16xf32>, vector<16x32xf32>, vector<4x32xf32> -> vector<4x32xf32>
    %c7 = arith.constant 7 : index
    %c0_31 = arith.constant 0 : index
    %73 = vector.load %arg5[%c7, %c0_31] : memref<16x128xf32, #tpu.memory_space<vmem>>, vector<1x32xf32>
    %74 = vector.broadcast %2 : vector<4x1xf32> to vector<4x32xf32>
    %75 = vector.broadcast %73 : vector<1x32xf32> to vector<4x32xf32>
    %76 = arith.mulf %74, %75 : vector<4x32xf32>
    %77 = arith.addf %72, %76 : vector<4x32xf32>
    %c8_32 = arith.constant 8 : index
    %c0_33 = arith.constant 0 : index
    %78 = vector.load %arg5[%c8_32, %c0_33] : memref<16x128xf32, #tpu.memory_space<vmem>>, vector<1x32xf32>
    %79 = vector.broadcast %3 : vector<4x1xf32> to vector<4x32xf32>
    %80 = vector.broadcast %78 : vector<1x32xf32> to vector<4x32xf32>
    %81 = arith.mulf %79, %80 : vector<4x32xf32>
    %82 = arith.addf %77, %81 : vector<4x32xf32>
    %c9 = arith.constant 9 : index
    %c0_34 = arith.constant 0 : index
    %83 = vector.load %arg5[%c9, %c0_34] : memref<16x128xf32, #tpu.memory_space<vmem>>, vector<1x32xf32>
    %84 = vector.broadcast %83 : vector<1x32xf32> to vector<4x32xf32>
    %85 = arith.addf %82, %84 : vector<4x32xf32>
    %cst_35 = arith.constant 0.000000e+00 : f32
    %86 = vector.broadcast %cst_35 : f32 to vector<4x32xf32>
    %87 = arith.maximumf %85, %86 : vector<4x32xf32>
    %c40 = arith.constant 40 : index
    %c0_36 = arith.constant 0 : index
    %88 = vector.load %arg4[%c40, %c0_36] : memref<72x128xf32, #tpu.memory_space<vmem>>, vector<32x32xf32>
    %cst_37 = arith.constant dense<0.000000e+00> : vector<4x32xf32>
    %89 = tpu.matmul %87, %88, %cst_37 {dimension_numbers = #tpu.dot_dimension_numbers<[1], [0], [0], [1], [0, 0, 1, 1], [], []>} : vector<4x32xf32>, vector<32x32xf32>, vector<4x32xf32> -> vector<4x32xf32>
    %c10 = arith.constant 10 : index
    %c0_38 = arith.constant 0 : index
    %90 = vector.load %arg5[%c10, %c0_38] : memref<16x128xf32, #tpu.memory_space<vmem>>, vector<1x32xf32>
    %91 = vector.broadcast %90 : vector<1x32xf32> to vector<4x32xf32>
    %92 = arith.addf %89, %91 : vector<4x32xf32>
    %cst_39 = arith.constant 0.000000e+00 : f32
    %93 = vector.broadcast %cst_39 : f32 to vector<4x32xf32>
    %94 = arith.maximumf %92, %93 : vector<4x32xf32>
    %c0_40 = arith.constant 0 : index
    %c0_41 = arith.constant 0 : index
    %95 = vector.load %arg6[%c0_40, %c0_41] : memref<33x180xf32, #tpu.memory_space<vmem>>, vector<32x180xf32>
    %cst_42 = arith.constant dense<0.000000e+00> : vector<4x180xf32>
    %96 = tpu.matmul %94, %95, %cst_42 {dimension_numbers = #tpu.dot_dimension_numbers<[1], [0], [0], [1], [0, 0, 1, 1], [], []>} : vector<4x32xf32>, vector<32x180xf32>, vector<4x180xf32> -> vector<4x180xf32>
    %c32 = arith.constant 32 : index
    %c0_43 = arith.constant 0 : index
    %97 = vector.load %arg6[%c32, %c0_43] : memref<33x180xf32, #tpu.memory_space<vmem>>, vector<1x180xf32>
    %98 = vector.broadcast %97 : vector<1x180xf32> to vector<4x180xf32>
    %99 = arith.addf %96, %98 : vector<4x180xf32>
    %100 = vector.extract_strided_slice %99 {offsets = [0, 0], sizes = [4, 100], strides = [1, 1]} : vector<4x180xf32> to vector<4x100xf32>
    %101 = arith.negf %100 : vector<4x100xf32>
    %102 = math.exp %101 : vector<4x100xf32>
    %cst_44 = arith.constant 1.000000e+00 : f32
    %103 = vector.broadcast %cst_44 : f32 to vector<4x100xf32>
    %104 = arith.addf %103, %102 : vector<4x100xf32>
    %105 = arith.divf %103, %104 : vector<4x100xf32>
    %106 = vector.extract_strided_slice %99 {offsets = [0, 100], sizes = [4, 80], strides = [1, 1]} : vector<4x180xf32> to vector<4x80xf32>
    %cst_45 = arith.constant 0.000000e+00 : f32
    %107 = vector.broadcast %cst_45 : f32 to vector<4x12xf32>
    %108 = tpu.concatenate %64, %70, %40, %46, %105, %106, %107 in 1 : vector<4x16xf32>, vector<4x16xf32>, vector<4x16xf32>, vector<4x16xf32>, vector<4x100xf32>, vector<4x80xf32>, vector<4x12xf32> -> vector<4x256xf32>
    %c0_46 = arith.constant 0 : index
    %c0_47 = arith.constant 0 : index
    %109 = vector.load %arg7[%c0_46, %c0_47] : memref<4x256xf32, #tpu.memory_space<vmem>>, vector<4x256xf32>
    tpu.vector_store %arg7[%c0_46, %c0_47], %108 {strides = array<i32>} : memref<4x256xf32, #tpu.memory_space<vmem>>, vector<4x256xf32>,
    return
  }
}

</mosaic_0001>

<bundles_post_ra>
// kernel: clear_forward.1
= control target key start
LH: loop header
LB: loop body
LE: loop exit
PB: predicated region body
PF: predicated region fallthrough
CT: control target
= control target key end

     0   :  { %v44_v0 = vlaneseq  ;;  %v1642_v1 = vmov 0.0   ;;  %vm1643_vm0 = vmmov 0   ;;  %v1644_v4 = vmov 1983009808   ;;  %s2046_s4 = inlined_call_operand.vmem [shape: f32[72,128], index: 4, kind: input, shape index: {}]   ;;  %s2047_s0 = inlined_call_operand.vmem [shape: f32[4,10,8], index: 0, kind: input, shape index: {}]   ;;  %s2048_s1 = inlined_call_operand.vmem [shape: f32[4,10,10], index: 1, kind: input, shape index: {}]   ;;  %s2049_s2 = inlined_call_operand.vmem [shape: f32[4,1], index: 2, kind: input, shape index: {}]   ;;  %s2050_s3 = inlined_call_operand.vmem [shape: f32[4,1], index: 3, kind: input, shape index: {}]   ;;  %s2051_s5 = inlined_call_operand.vmem [shape: f32[16,128], index: 5, kind: input, shape index: {}]   ;;  %s2052_s6 = inlined_call_operand.vmem [shape: f32[33,180], index: 6, kind: input, shape index: {}]   ;;  %s2053_s7 = inlined_call_operand.vmem [shape: f32[4,256], index: 7, kind: output, shape index: {}]  }
   0x1   :  { %1532 = vmatprep.subr.mxu0 %v1642_v1  ;;  %v105_v2 = vld [vmem:[%s2046_s4] sm:$0xff]  ;;  %1534 = vmatprep.mubr.msk.f32.mxu0 %vm1643_vm0, %v1642_v1  ;;  %v116_v5 = vunpack.c.l.s4 %v1644_v4  ;;  %v28_v6 = vld [vmem:[%s2047_s0 + $0x10] sm:$0xff]  ;;  %v1459_v17 = vld.sshfl [vmem:[%s2047_s0 + $0x8] sm:$0x3 pattern:$0x76325410] }
   0x2   :  { %v26_v3 = vld [vmem:[%s2047_s0] sm:$0xff]  ;;  %1533 = vmatpush3.msra.mxu0 %v105_v2  ;;  %v1700_v7 = vshrl.u32 %v44_v0, 7  ;;  %v138_v10 = vcombine.high %v28_v6, %v28_v6  ;;  %v1705_v12 = vand.u32 127, %v44_v0  ;;  %v32_v15 = vld [vmem:[%s2047_s0 + $0x30] sm:$0xff]  ;;  %vm63_vm2 = vcmask 80896  }
   0x3   :  { %v114_v8 = vcombine.high %v26_v3, %v26_v3  ;;  %v117_v9 = vunpack.c.0.s8 %v116_v5  ;;  %v30_v11 = vld [vmem:[%s2047_s0 + $0x20] sm:$0xff]  ;;  %1584 = vmatprep.subr.mxu0 %v1642_v1  ;;  %v186_v25 = vcombine.high %v32_v15, %v32_v15  ;;  %v1460_v30 = vld.sshfl [vmem:[%s2047_s0 + $0x18] sm:$0x3 pattern:$0x76325410]  ;;  %vm295_vm3 = vcmask 64512  }
   0x4   :  { %v162_v13 = vcombine.high %v30_v11, %v30_v11  ;;  %v34_v16 = vld [vmem:[%s2048_s1] sm:$0xff]  ;;  %vm49_vm1 = vcmp.eq.s32.totalorder %v1700_v7, %v1705_v12  ;;  %v46_v34 = vadd.s32 8, %v1700_v7  ;;  %v1461_v41 = vld.sshfl [vmem:[%s2047_s0 + $0x28] sm:$0x3 pattern:$0x76325410] }
   0x5   :  { %v1709_v14 = vsub.s32 %v117_v9, %v1700_v7  ;;  %v55_v18 = vsel %vm49_vm1, 1.0, %v34_v16  ;;  %v35_v47 = vld [vmem:[%s2048_s1 + $0x8] sm:$0x3]  ;;  %vm67_vm4 = vcmask 74752   ;;  %v37_v48 = vld [vmem:[%s2048_s1 + $0x18] sm:$0x3] }
   0x6   :  { %1553 = vmatprep.mubr.msk.f32.mxu1 %vm63_vm2, %v55_v18  ;;  %vm50_vm5 = vcmp.eq.s32.totalorder %v46_v34, %v1705_v12  ;;  %v36_v52 = vld [vmem:[%s2048_s1 + $0x10] sm:$0xff]  ;;  %v1462_v55 = vld.sshfl [vmem:[%s2047_s0 + $0x38] sm:$0x3 pattern:$0x76325410]  ;;  %v38_v2 = vld [vmem:[%s2048_s1 + $0x20] sm:$0xff] }
   0x7   :  { %v121_v19 = vrot.slane %v26_v3, %v1709_v14  ;;  %v128_v20 = vrot.slane %v114_v8, %v1709_v14  ;;  %v145_v21 = vrot.slane %v28_v6, %v1709_v14  ;;  %v152_v22 = vrot.slane %v138_v10, %v1709_v14  ;;  %v39_v62 = vld [vmem:[%s2048_s1 + $0x28] sm:$0x3]  ;;  %v40_v16 = vld [vmem:[%s2048_s1 + $0x30] sm:$0xff] }
   0x8   :  { %v169_v23 = vrot.slane %v30_v11, %v1709_v14  ;;  %v176_v24 = vrot.slane %v162_v13, %v1709_v14  ;;  %v193_v33 = vrot.slane %v32_v15, %v1709_v14  ;;  %v200_v42 = vrot.slane %v186_v25, %v1709_v14  ;;  %v41_v15 = vld [vmem:[%s2048_s1 + $0x38] sm:$0x3] }
   0x9   :  { %v129_v26 = vcombine.high %v121_v19, %v121_v19  ;;  %v130_v27 = vcombine.high %v128_v20, %v128_v20  ;;  %v153_v28 = vcombine.high %v145_v21, %v145_v21  ;;  %v227_v29 = vcombine.low %v1459_v17, %v145_v21 }
   0xa   :  { %v154_v31 = vcombine.high %v152_v22, %v152_v22  ;;  %v177_v32 = vcombine.high %v169_v23, %v169_v23  ;;  %v178_v38 = vcombine.high %v176_v24, %v176_v24  ;;  %v262_v51 = vcombine.low %v1461_v41, %v193_v33 }
   0xb   :  { %v210_v35 = vcombine.low %v121_v19, %v129_v26  ;;  %v211_v36 = vcombine.low %v128_v20, %v130_v27  ;;  %v228_v37 = vcombine.low %v153_v28, %v152_v22  ;;  %v235_v45 = vrot.slane %v227_v29, %v1709_v14 }
   0xc   :  { %v244_v39 = vcombine.low %v154_v31, %v1460_v30  ;;  %v245_v40 = vcombine.low %v169_v23, %v177_v32  ;;  %v261_v50 = vcombine.low %v176_v24, %v178_v38  ;;  %v201_v56 = vcombine.high %v193_v33, %v193_v33 }
   0xd   :  { %v218_v43 = vrot.slane %v210_v35, %v1709_v14  ;;  %v225_v44 = vrot.slane %v211_v36, %v1709_v14  ;;  %v242_v46 = vrot.slane %v228_v37, %v1709_v14  ;;  %v1762_v57 = vsel %vm50_vm5, 1.0, %v35_v47 }
   0xe   :  { %v252_v53 = vrot.slane %v244_v39, %v1709_v14  ;;  %v259_v54 = vrot.slane %v245_v40, %v1709_v14  ;;  %v202_v59 = vcombine.high %v200_v42, %v200_v42  ;;  %v68_v60 = vsel %vm67_vm4, %v1762_v57, 0.0 }
   0xf   :  { %v226_v49 = vcombine.low %v218_v43, %v225_v44  ;;  %v243_v58 = vcombine.low %v235_v45, %v242_v46  ;;  %v1769_v61 = vsel %vm50_vm5, 1.0, %v37_v48  ;;  %69 = vadd.xlane.f32.xlu0 %v68_v60  ;;  %v1781_v0 = vsel %vm49_vm1, 1.0, %v36_v52 }
  0x10   :  { %v74_v63 = vsel %vm67_vm4, %v1769_v61, 0.0  ;;  %v64_v3 = vsel %vm63_vm2, %v55_v18, 0.0  ;;  %v269_v4 = vrot.slane %v261_v50, %v1709_v14  ;;  %v276_v5 = vrot.slane %v262_v51, %v1709_v14 }
  0x11   :  { %1535 = vmatmul.mubr.msk.f32.vlgmr.msra.gmra.mxu0 %vm295_vm3, %v226_v49  ;;  %75 = vadd.xlane.f32.xlu1 %v74_v63  ;;  %v71_v6 = vsel %vm63_vm2, %v1781_v0, 0.0  ;;  %v1793_v8 = vsel %vm50_vm5, 1.0, %v39_v62  ;;  %v260_v9 = vcombine.low %v252_v53, %v259_v54  ;;  %v278_v10 = vcombine.low %v201_v56, %v200_v42 }
  0x12   :  { %1537 = vmatprep.mubr.msk.f32.mxu0 %vm1643_vm0, %v1642_v1  ;;  %v279_v11 = vcombine.low %v202_v59, %v1462_v55  ;;  %v1799_v13 = vsel %vm49_vm1, 1.0, %v38_v2  ;;  %v80_v17 = vsel %vm67_vm4, %v1793_v8, 0.0  ;;  %v1815_v19 = vsel %vm50_vm5, 1.0, %v41_v15 }
  0x13   :  { %65 = vadd.xlane.f32.xlu0 %v64_v3  ;;  %v77_v18 = vsel %vm63_vm2, %v1799_v13, 0.0  ;;  %v277_v20 = vcombine.low %v269_v4, %v276_v5  ;;  %v286_v21 = vrot.slane %v278_v10, %v1709_v14  ;;  %v1823_v23 = vsel %vm49_vm1, 1.0, %v40_v16 }
  0x14   :  { %v293_v22 = vrot.slane %v279_v11, %v1709_v14  ;;  %v86_v24 = vsel %vm67_vm4, %v1815_v19, 0.0  ;;  %v83_v25 = vsel %vm63_vm2, %v1823_v23, 0.0  ;;  %v1645_v12 = vmov 0  }
  0x15   :  { %1538 = vmatmul.mubr.msk.f32.gmra.mxu0 %vm295_vm3, %v243_v58  ;;  %72 = vadd.xlane.f32.xlu1 %v71_v6  ;;  %vm604_vm6 = vcmask 1041408   ;;  %vm945_vm7 = vcmask 123904   ;;  %vm943_vm8 = vcmask 130048   ;;  %vm1035_vm9 = vcmask 1041409  }
  0x16   :  { %1540 = vmatprep.mubr.msk.f32.mxu0 %vm1643_vm0, %v1642_v1  ;;  %v294_v26 = vcombine.low %v286_v21, %v293_v22  ;;  %1608 = vset.pattern.permute.xlu0 %v1645_v12  ;;  %vm1038_vm10 = vcmask 1042434   ;;  %vm1041_vm11 = vcmask 1043459   ;;  %vm1244_vm12 = vcmask 261120  }
  0x17   :  { %81 = vadd.xlane.f32.xlu0 %v80_v17  ;;  %1609 = vset.pattern.permute.xlu1 %v1645_v12  ;;  %vm1443_vm13 = vcmask 392192   ;;  %vm1438_vm14 = vcmask 523264   ;;  %vm1446_vm15 = vcmask 293888  }
  0x19   :  { %1541 = vmatmul.mubr.msk.f32.gmra.mxu0 %vm295_vm3, %v260_v9  ;;  %78 = vadd.xlane.f32.xlu1 %v77_v18 }
  0x1a   :  { %1543 = vmatprep.mubr.msk.f32.mxu0 %vm1643_vm0, %v1642_v1 }
  0x1b   :  { %87 = vadd.xlane.f32.xlu0 %v86_v24 }
  0x1d   :  { %1544 = vmatmul.mubr.msk.f32.gmra.mxu0 %vm295_vm3, %v277_v20  ;;  %84 = vadd.xlane.f32.xlu1 %v83_v25 }
  0x1e   :  { %1546 = vmatprep.mubr.msk.f32.mxu0 %vm1643_vm0, %v1642_v1 }
  0x21   :  { %1547 = vmatmul.mubr.msk.f32.gmra.mxu0 %vm295_vm3, %v294_v26 }
  0x22   :  { %1588 = vmatprep.mubr.msk.f32.mxu0 %vm1643_vm0, %v1642_v1 }
  0x98   :  { %v70_v27 = vpop.xlane.xlu0 %69 }
  0x99   :  { %v90_v29 = vmax.f32 %v70_v27, 1.0 }
  0x9a   :  { %v76_v28 = vpop.xlane.xlu1 %75 }
  0x9b   :  { %1614 = vrsqrt.f32 %v90_v29  ;;  %v92_v33 = vmax.f32 %v76_v28, 1.0 }
  0x9c   :  { %v66_v30 = vpop.xlane.xlu0 %65 }
  0x9d   :  { %v89_v31 = vmax.f32 %v66_v30, 1.0 }
  0x9e   :  { %v73_v32 = vpop.xlane.xlu1 %72 }
  0x9f   :  { %1616 = vrsqrt.f32 %v89_v31  ;;  %v91_v35 = vmax.f32 %v73_v32, 1.0 }
  0xa0   :  { %v82_v34 = vpop.xlane.xlu0 %81  ;;  %1618 = vrsqrt.f32 %v92_v33 }
  0xa1   :  { %v94_v36 = vmax.f32 %v82_v34, 1.0  ;;  %1620 = vrsqrt.f32 %v91_v35 }
  0xa2   :  { %v79_v37 = vpop.xlane.xlu1 %78 }
  0xa3   :  { %1622 = vrsqrt.f32 %v94_v36  ;;  %v93_v44 = vmax.f32 %v79_v37, 1.0 }
  0xa4   :  { %v88_v45 = vpop.xlane.xlu0 %87 }
  0xa5   :  { %v96_v53 = vmax.f32 %v88_v45, 1.0  ;;  %1624 = vrsqrt.f32 %v93_v44 }
  0xa6   :  { %v85_v51 = vpop.xlane.xlu1 %84 }
  0xa7   :  { %v95_v60 = vmax.f32 %v85_v51, 1.0  ;;  %1626 = vrsqrt.f32 %v96_v53 }
  0xa8   :  { %v1840_v54 = vpop.eup %1614 }
  0xa9   :  { %1628 = vrsqrt.f32 %v95_v60 }
  0xac   :  { %v1846_v5 = vpop.eup %1616 }
  0xad   :  { %v1852_v21 = vpop.eup %1618 }
  0xae   :  { %v1860_v30 = vpop.eup %1620 }
  0xb0   :  { %v1863_v34 = vpop.eup %1622 }
  0xd1   :  { %v372_v38 = vpop.f32.mrf.mxu0 }
  0xd2   :  { %v401_v39 = vcombine.high %v372_v38, %v372_v38  ;;  %v408_v40 = vrot.slane %v372_v38, %v1709_v14 }
  0xd3   :  { %v1536_v41 = vpop.f32.mrf.mxu0 }
  0xd4   :  { %v415_v42 = vrot.slane %v401_v39, %v1709_v14  ;;  %v416_v43 = vcombine.high %v408_v40, %v408_v40 }
  0xd5   :  { %v377_v46 = vpop.f32.mrf.mxu0 }
  0xd6   :  { %v417_v47 = vcombine.high %v415_v42, %v415_v42  ;;  %v486_v48 = vcombine.low %v408_v40, %v416_v43  ;;  %v418_v49 = vcombine.high %v377_v46, %v377_v46  ;;  %v425_v50 = vrot.slane %v377_v46, %v1709_v14 }
  0xd7   :  { %v1539_v52 = vpop.f32.mrf.mxu0 }
  0xd8   :  { %v487_v55 = vcombine.low %v415_v42, %v417_v47  ;;  %v432_v56 = vrot.slane %v418_v49, %v1709_v14  ;;  %v433_v58 = vcombine.high %v425_v50, %v425_v50  ;;  %v509_v62 = vrot.slane %v425_v50, %v1709_v14 }
  0xd9   :  { %v382_v59 = vpop.f32.mrf.mxu0  ;;  %v494_v63 = vrot.slane %v486_v48, %v1709_v14 }
  0xda   :  { %v501_v2 = vrot.slane %v487_v55, %v1709_v14  ;;  %v434_v3 = vcombine.high %v432_v56, %v432_v56  ;;  %v435_v4 = vcombine.high %v382_v59, %v382_v59  ;;  %v510_v6 = vcombine.low %v433_v58, %v432_v56 }
  0xdb   :  { %v442_v9 = vrot.slane %v382_v59, %v1709_v14  ;;  %v1542_v10 = vpop.f32.mrf.mxu0  ;;  %v591_v11 = vmul.f32 %v1840_v54, %v509_v62 }
  0xdc   :  { %v449_v15 = vrot.slane %v435_v4, %v1709_v14  ;;  %v502_v16 = vcombine.low %v494_v63, %v501_v2  ;;  %v518_v12 = vrot.slane %v510_v6, %v1709_v14  ;;  %v1141_v63 = vld [vmem:[%s2046_s4 + $0x20] sm:$0xff] }
  0xdd   :  { %v450_v17 = vcombine.high %v442_v9, %v442_v9  ;;  %v511_v18 = vcombine.low %v434_v3, %v442_v9  ;;  %1549 = vmatprep.subr.msk.mxu1 %vm604_vm6, %v591_v11  ;;  %v387_v20 = vpop.f32.mrf.mxu0  ;;  %1585 = vmatpush3.msra.mxu0 %v1141_v63  ;;  %v1482_v2 = vld [vmem:[%s2051_s5 + $0x2] ss:$0 sm:$0xff]  ;;  %v1483_v3 = vld [vmem:[%s2051_s5 + $0x3] ss:$0 sm:$0xff] }
  0xde   :  { %v451_v22 = vcombine.high %v449_v15, %v449_v15  ;;  %v452_v24 = vcombine.high %v387_v20, %v387_v20  ;;  %v459_v25 = vrot.slane %v387_v20, %v1709_v14  ;;  %1550 = vmatpush3.msk.msra.mxu1 %vm604_vm6, %v591_v11  ;;  %v590_v26 = vmul.f32 %v1846_v5, %v502_v16 }
  0xdf   :  { %v525_v27 = vrot.slane %v511_v18, %v1709_v14  ;;  %v533_v28 = vrot.slane %v450_v17, %v1709_v14  ;;  %v1545_v29 = vpop.f32.mrf.mxu0  ;;  %1586 = vmatprep.subr.mxu0 %v1642_v1 }
  0xe0   :  { %v534_v31 = vcombine.low %v449_v15, %v451_v22  ;;  %v466_v32 = vrot.slane %v452_v24, %v1709_v14  ;;  %v467_v33 = vcombine.high %v459_v25, %v459_v25  ;;  %1551 = vmatprep.subr.mxu1 %v590_v26 }
  0xe1   :  { %v392_v35 = vpop.f32.mrf.mxu0  ;;  %1552 = vmatpush3.msra.mxu1 %v590_v26  ;;  %v593_v36 = vmul.f32 %v1852_v21, %v533_v28  ;;  %v526_v37 = vcombine.low %v518_v12, %v525_v27 }
  0xe2   :  { %v535_v38 = vcombine.low %v459_v25, %v467_v33  ;;  %v557_v39 = vrot.slane %v466_v32, %v1709_v14  ;;  %v468_v40 = vcombine.high %v466_v32, %v466_v32  ;;  %1554 = vmatmul.mubr.msk.f32.vlgmr.msra.gmra.mxu1 %vm63_vm2, %v1762_v57  ;;  %v469_v41 = vcombine.high %v392_v35, %v392_v35  ;;  %v1878_v57 = vpop.eup %1624 }
  0xe3   :  { %v476_v42 = vrot.slane %v392_v35, %v1709_v14  ;;  %1556 = vmatprep.subr.msk.mxu1 %vm604_vm6, %v593_v36  ;;  %v1548_v43 = vpop.f32.mrf.mxu0  ;;  %v592_v44 = vmul.f32 %v1860_v30, %v526_v37  ;;  %1560 = vmatprep.mubr.msk.f32.mxu1 %vm63_vm2, %v1781_v0  ;;  %v542_v45 = vrot.slane %v534_v31, %v1709_v14  ;;  %v1884_v0 = vpop.eup %1626 }
  0xe4   :  { %v549_v46 = vrot.slane %v535_v38, %v1709_v14  ;;  %1557 = vmatpush3.msk.msra.mxu1 %vm604_vm6, %v593_v36  ;;  %v595_v47 = vmul.f32 %v1863_v34, %v557_v39  ;;  %v483_v48 = vrot.slane %v469_v41, %v1709_v14  ;;  %v1893_v60 = vpop.eup %1628 }
  0xe5   :  { %v484_v49 = vcombine.high %v476_v42, %v476_v42  ;;  %v558_v50 = vcombine.low %v468_v40, %v476_v42  ;;  %1558 = vmatprep.subr.mxu1 %v592_v44 }
  0xe6   :  { %1559 = vmatpush3.msra.mxu1 %v592_v44  ;;  %v550_v51 = vcombine.low %v542_v45, %v549_v46  ;;  %v485_v52 = vcombine.high %v483_v48, %v483_v48 }
  0xe7   :  { %v559_v53 = vcombine.low %v484_v49, %v483_v48  ;;  %1561 = vmatmul.mubr.msk.f32.vlgmr.msra.gmra.mxu1 %vm63_vm2, %v1769_v61  ;;  %1563 = vmatprep.subr.msk.mxu1 %vm604_vm6, %v595_v47  ;;  %v566_v56 = vrot.slane %v558_v50, %v1709_v14 }
  0xe8   :  { %1564 = vmatpush3.msk.msra.mxu1 %vm604_vm6, %v595_v47  ;;  %v594_v55 = vmul.f32 %v1878_v57, %v550_v51  ;;  %1567 = vmatprep.mubr.msk.f32.mxu1 %vm63_vm2, %v1799_v13  ;;  %v581_v59 = vrot.slane %v485_v52, %v1709_v14 }
  0xe9   :  { %v573_v58 = vrot.slane %v559_v53, %v1709_v14  ;;  %v42_v14 = vld [vmem:[%s2049_s2] sm:$0xf] }
  0xea   :  { %1565 = vmatprep.subr.mxu1 %v594_v55  ;;  %v597_v61 = vmul.f32 %v1884_v0, %v581_v59  ;;  %1002 = vperm.xlu0 %1608, %v42_v14  }
  0xeb   :  { %1566 = vmatpush3.msra.mxu1 %v594_v55  ;;  %v574_v62 = vcombine.low %v566_v56, %v573_v58 }
  0xec   :  { %1568 = vmatmul.mubr.msk.f32.vlgmr.msra.gmra.mxu1 %vm63_vm2, %v1793_v8  ;;  %1570 = vmatprep.subr.msk.mxu1 %vm604_vm6, %v597_v61  ;;  %v1023_v8 = vld [vmem:[%s2046_s4 + $0x10] sm:$0xff] }
  0xed   :  { %v596_v13 = vmul.f32 %v1893_v60, %v574_v62  ;;  %1574 = vmatprep.mubr.msk.f32.mxu1 %vm63_vm2, %v1823_v23  ;;  %1571 = vmatpush3.msk.msra.mxu1 %vm604_vm6, %v597_v61  ;;  %v1022_v23 = vld [vmem:[%s2046_s4 + $0x8] sm:$0xff] }
  0xef   :  { %1572 = vmatprep.subr.mxu1 %v596_v13 }
  0xf0   :  { %1573 = vmatpush3.msra.mxu1 %v596_v13 }
  0xf1   :  { %1575 = vmatmul.mubr.msk.f32.vlgmr.msra.gmra.mxu1 %vm63_vm2, %v1815_v19  ;;  %1577 = vmatprep.subr.mxu1 %v1642_v1  ;;  %v43_v19 = vld [vmem:[%s2050_s3] sm:$0xf]  ;;  %s1646_s3 = smov 32  }
  0xf2   :  { %1581 = vmatprep.mubr.msk.f32.mxu1 %vm1643_vm0, %v1642_v1  ;;  %1578 = vmatpush3.msra.mxu1 %v1023_v8 }
  0xf3   :  { %1579 = vmatprep.subr.mxu1 %v1642_v1  ;;  %1118 = vperm.xlu1 %1609, %v43_v19   ;;  %v1481_v19 = vld [vmem:[%s2051_s5 + $0x1] ss:$0 sm:$0xff] }
  0xf4   :  { %1580 = vmatpush3.msra.mxu1 %v1022_v23 }
  0xf5   :  { %1591 = vmatprep.subr.mxu1 %v1642_v1 }
 0x165   :  { %v1932_v4 = vpop.permute.xlu0 %1002 }
 0x166   :  { %v1009_v6 = vmul.f32 %v1482_v2, %v1932_v4 }
 0x168   :  { %v1015_v10 = vadd.f32 %v1483_v3, %v1009_v6 }
 0x16a   :  { %v1484_v16 = vmul.f32 -1.442695, %v1015_v10  ;;  %1421 = vrot.lane.b32.xlu1 %v1015_v10, %s1646_s3 }
 0x16c   :  { %1630 = vpow2.f32 %v1484_v16 }
 0x179   :  { %v1631_v41 = vpop.eup %1630 }
 0x17a   :  { %v1019_v47 = vadd.f32 1.0, %v1631_v41  ;;  %v1326_v41 = vld [vmem:[%s2052_s6 + $0x38] sm:$0xff] }
 0x17c   :  { %1632 = vrcp.f32 %v1019_v47 }
 0x1a2   :  { %v1555_v9 = vpop.f32.mrf.mxu1 }
 0x1a3   :  { %v936_v11 = vmul.f32 %v1840_v54, %v1555_v9 }
 0x1a4   :  { %v674_v15 = vpop.f32.mrf.mxu1 }
 0x1a5   :  { %v935_v17 = vmul.f32 %v1846_v5, %v674_v15  ;;  %v946_v18 = vsel %vm945_vm7, %v936_v11, 0.0  ;;  %v1633_v11 = vpop.eup %1632 }
 0x1a6   :  { %1425 = vrot.lane.b32.xlu1 %v1633_v11, %s1646_s3 }
 0x1a7   :  { %v944_v20 = vsel %vm943_vm8, %v935_v17, 0.0  ;;  %v1562_v22 = vpop.f32.mrf.mxu1 }
 0x1a8   :  { %v947_v24 = vadd.f32 %v946_v18, %v944_v20  ;;  %v938_v25 = vmul.f32 %v1852_v21, %v1562_v22 }
 0x1a9   :  { %v758_v26 = vpop.f32.mrf.mxu1 }
 0x1aa   :  { %v937_v54 = vmul.f32 %v1860_v30, %v758_v26  ;;  %v948_v12 = vrot.slane %v947_v24, 4  ;;  %v955_v27 = vsel %vm945_vm7, %v938_v25, 0.0 }
 0x1ac   :  { %v954_v28 = vsel %vm943_vm8, %v937_v54, 0.0  ;;  %v1569_v29 = vpop.f32.mrf.mxu1  ;;  %v949_v33 = vadd.f32 %v948_v12, %v947_v24  ;;  %v1140_v54 = vld [vmem:[%s2046_s4 + $0x18] sm:$0xff]  ;;  %v1485_v12 = vld [vmem:[%s2051_s5 + $0x4] ss:$0 sm:$0xff] }
 0x1ad   :  { %v956_v31 = vadd.f32 %v955_v27, %v954_v28  ;;  %v940_v5 = vmul.f32 %v1863_v34, %v1569_v29  ;;  %1587 = vmatpush3.msra.mxu0 %v1140_v54  ;;  %v1487_v27 = vld [vmem:[%s2051_s5 + $0x5] ss:$0 sm:$0xff]  ;;  %v1119_v28 = vpop.permute.xlu1 %1118  ;;  %v1029_v29 = vmul.f32 %v1485_v12, %v1932_v4 }
 0x1ae   :  { %v842_v32 = vpop.f32.mrf.mxu1  ;;  %v950_v42 = vrot.slane %v949_v33, 2  ;;  %1367 = vmatprep.subr.mxu0 %v1326_v41 }
 0x1af   :  { %v957_v35 = vrot.slane %v956_v31, 4  ;;  %v939_v36 = vmul.f32 %v1878_v57, %v842_v32  ;;  %v964_v21 = vsel %vm945_vm7, %v940_v5, 0.0 }
 0x1b0   :  { %v951_v50 = vadd.f32 %v950_v42, %v949_v33  ;;  %v1488_v33 = vld [vmem:[%s2051_s5 + $0x6] ss:$0 sm:$0xff]  ;;  %v1325_v42 = vld [vmem:[%s2052_s6 + $0x30] sm:$0xff] }
 0x1b1   :  { %v958_v37 = vadd.f32 %v957_v35, %v956_v31  ;;  %v963_v38 = vsel %vm943_vm8, %v939_v36, 0.0  ;;  %v1576_v30 = vpop.f32.mrf.mxu1  ;;  %v1125_v31 = vmul.f32 %v1487_v27, %v1119_v28 }
 0x1b2   :  { %v965_v39 = vadd.f32 %v964_v21, %v963_v38  ;;  %v942_v40 = vmul.f32 %v1884_v0, %v1576_v30  ;;  %v952_v58 = vrot.slane %v951_v50, 1  ;;  %v1238_v38 = vld [vmem:[%s2046_s4 + $0x40] sm:$0xff]  ;;  %v1237_v30 = vld [vmem:[%s2046_s4 + $0x38] sm:$0xff] }
 0x1b3   :  { %v959_v43 = vrot.slane %v958_v37, 2  ;;  %v926_v44 = vpop.f32.mrf.mxu1 }
 0x1b4   :  { %v966_v45 = vrot.slane %v965_v39, 4  ;;  %v941_v34 = vmul.f32 %v1893_v60, %v926_v44  ;;  %v973_v57 = vsel %vm945_vm7, %v942_v40, 0.0  ;;  %v1480_v60 = vld [vmem:[%s2051_s5] ss:$0 sm:$0xff]  ;;  %v953_v8 = vadd.f32 %v952_v58, %v951_v50  ;;  %v1235_v40 = vld [vmem:[%s2046_s4 + $0x28] sm:$0xff] }
 0x1b5   :  { %v960_v46 = vadd.f32 %v959_v43, %v958_v37  ;;  %v1324_v43 = vld [vmem:[%s2052_s6 + $0x28] sm:$0xff] }
 0x1b6   :  { %v967_v48 = vadd.f32 %v966_v45, %v965_v39  ;;  %v972_v49 = vsel %vm943_vm8, %v941_v34, 0.0  ;;  %v986_v9 = vmul.f32 %v1480_v60, %v953_v8  ;;  %v1236_v39 = vld [vmem:[%s2046_s4 + $0x30] sm:$0xff]  ;;  %v1492_v44 = vld [vmem:[%s2051_s5 + $0x8] ss:$0 sm:$0xff]  ;;  %v1336_v8 = vsub.s32 1, %v1700_v7 }
 0x1b7   :  { %v961_v51 = vrot.slane %v960_v46, 1  ;;  %v974_v52 = vadd.f32 %v973_v57, %v972_v49 }
 0x1b8   :  { %v968_v53 = vrot.slane %v967_v48, 2  ;;  %v995_v18 = vadd.f32 %v1481_v19, %v986_v9 }
 0x1b9   :  { %v962_v0 = vadd.f32 %v961_v51, %v960_v46  ;;  %v975_v55 = vrot.slane %v974_v52, 4  ;;  %v1226_v46 = vmul.f32 %v1492_v44, %v1119_v28 }
 0x1ba   :  { %v969_v56 = vadd.f32 %v968_v53, %v967_v48  ;;  %v1493_v48 = vld [vmem:[%s2051_s5 + $0x9] ss:$0 sm:$0xff]  ;;  %v1321_v53 = vld [vmem:[%s2052_s6 + $0x10] sm:$0xff] }
 0x1bb   :  { %v976_v59 = vadd.f32 %v975_v55, %v974_v52  ;;  %v987_v62 = vmul.f32 %v1480_v60, %v962_v0  ;;  %v1323_v52 = vld [vmem:[%s2052_s6 + $0x20] sm:$0xff]  ;;  %v1320_v0 = vld [vmem:[%s2052_s6 + $0x8] sm:$0xff] }
 0x1bc   :  { %v970_v61 = vrot.slane %v969_v56, 1  ;;  %v1319_v55 = vld [vmem:[%s2052_s6] sm:$0xff] }
 0x1bd   :  { %v977_v13 = vrot.slane %v976_v59, 2  ;;  %v996_v2 = vadd.f32 %v1481_v19, %v987_v62  ;;  %v1332_v62 = vsub.s32 0, %v1700_v7 }
 0x1be   :  { %v971_v14 = vadd.f32 %v970_v61, %v969_v56  ;;  %v1494_v56 = vld [vmem:[%s2051_s5 + $0xa] ss:$0 sm:$0xff] }
 0x1bf   :  { %v978_v23 = vadd.f32 %v977_v13, %v976_v59  ;;  %v1034_v15 = vrot.slane %v996_v2, 7  ;;  %v1496_v13 = vld [vmem:[%s2052_s6 + $0x40] ss:$8 sm:$0x3] }
 0x1c0   :  { %v988_v63 = vmul.f32 %v1480_v60, %v971_v14  ;;  %v1333_v14 = vrot.slane %v1496_v13, %v1332_v62 }
 0x1c1   :  { %v979_v3 = vrot.slane %v978_v23, 1  ;;  %v1036_v22 = vsel %vm1035_vm9, %v1034_v15, %v995_v18 }
 0x1c2   :  { %v997_v6 = vadd.f32 %v1481_v19, %v988_v63  ;;  %v1337_v63 = vrot.slane %v1496_v13, %v1336_v8 }
 0x1c3   :  { %v980_v10 = vadd.f32 %v979_v3, %v978_v23 }
 0x1c4   :  { %v1037_v17 = vrot.slane %v997_v6, 6 }
 0x1c5   :  { %v989_v16 = vmul.f32 %v1480_v60, %v980_v10 }
 0x1c6   :  { %v1039_v25 = vsel %vm1038_vm10, %v1037_v17, %v1036_v22 }
 0x1c7   :  { %v998_v20 = vadd.f32 %v1481_v19, %v989_v16 }
 0x1c9   :  { %v1040_v24 = vrot.slane %v998_v20, 5 }
 0x1cb   :  { %v1042_v26 = vsel %vm1041_vm11, %v1040_v24, %v1039_v25 }
 0x1cc   :  { %1582 = vmatmul.mubr.msk.f32.vlgmr.msra.gmra.mxu1 %vm943_vm8, %v1042_v26 }
 0x1cd   :  { %1599 = vmatprep.mubr.msk.f32.mxu1 %vm1643_vm0, %v1642_v1  ;;  %1592 = vmatpush3.msra.mxu1 %v1238_v38  ;;  %vm1448_vm0 = vcmask 949248  }
 0x1ce   :  { %1593 = vmatprep.subr.mxu1 %v1642_v1 }
 0x1cf   :  { %1594 = vmatpush3.msra.mxu1 %v1237_v30 }
 0x1d0   :  { %1595 = vmatprep.subr.mxu1 %v1642_v1 }
 0x1d1   :  { %1596 = vmatpush3.msra.mxu1 %v1236_v39 }
 0x1d2   :  { %1597 = vmatprep.subr.mxu1 %v1642_v1 }
 0x1d3   :  { %1598 = vmatpush3.msra.mxu1 %v1235_v40 }
 0x1dc   :  { %v1422_v17 = vpop.permute.xlu1 %1421 }
 0x218   :  { %v1426_v18 = vpop.permute.xlu1 %1425 }
 0x28c   :  { %v1111_v5 = vpop.f32.mrf.mxu1 }
 0x28d   :  { %v1112_v32 = vadd.f32 %v1111_v5, %v1029_v29 }
 0x28e   :  { %v1583_v35 = vpop.f32.mrf.mxu1 }
 0x28f   :  { %v1126_v36 = vadd.f32 %v1125_v31, %v1112_v32 }
 0x291   :  { %v1132_v37 = vadd.f32 %v1488_v33, %v1126_v36 }
 0x293   :  { %v1975_v21 = vmax.f32 %v1132_v37, 0.0 }
 0x295   :  { %1589 = vmatmul.mubr.msk.f32.vlgmr.msra.gmra.mxu0 %vm943_vm8, %v1975_v21  ;;  %v1489_v15 = vmul.f32 -1.442695, %v1975_v21 }
 0x296   :  { %1407 = vmatprep.mubr.f32.mxu0 %v1642_v1  ;;  %1368 = vmatpush1.msra.mxu0 %v1325_v42  ;;  %v1490_v1 = vld [vmem:[%s2051_s5 + $0x7] ss:$0 sm:$0xff]  ;;  %s1647_s5 = smov 64  }
 0x297   :  { %1369 = vmatprep.subr.mxu0 %v1324_v43  ;;  %v1147_v45 = vmul.f32 %v1490_v1, %v1932_v4  ;;  %v1322_v4 = vld [vmem:[%s2052_s6 + $0x18] sm:$0xff] }
 0x298   :  { %1370 = vmatpush1.msra.mxu0 %v1323_v52 }
 0x299   :  { %1371 = vmatprep.subr.mxu0 %v1322_v4 }
 0x29a   :  { %1372 = vmatpush1.msra.mxu0 %v1321_v53 }
 0x29b   :  { %1373 = vmatprep.subr.mxu0 %v1320_v0 }
 0x29c   :  { %1374 = vmatpush1.msra.mxu0 %v1319_v55 }
 0x355   :  { %v1217_v34 = vpop.f32.mrf.mxu0 }
 0x356   :  { %v1218_v47 = vadd.f32 %v1217_v34, %v1147_v45 }
 0x357   :  { %v1590_v57 = vpop.f32.mrf.mxu0 }
 0x358   :  { %v1227_v49 = vadd.f32 %v1226_v46, %v1218_v47 }
 0x35a   :  { %v1233_v50 = vadd.f32 %v1493_v48, %v1227_v49 }
 0x35c   :  { %v1234_v51 = vmax.f32 %v1233_v50, 0.0 }
 0x35e   :  { %1600 = vmatmul.mubr.msk.f32.vlgmr.msra.gmra.mxu1 %vm1244_vm12, %v1234_v51 }
 0x41e   :  { %v1314_v58 = vpop.f32.mrf.mxu1 }
 0x41f   :  { %v1315_v59 = vadd.f32 %v1494_v56, %v1314_v58 }
 0x420   :  { %v1601_v60 = vpop.f32.mrf.mxu1 }
 0x421   :  { %v1318_v61 = vmax.f32 %v1315_v59, 0.0 }
 0x423   :  { %1497 = vmatmul.mubr.msk.f32.vlgmr.msra.gmra.mxu0 %vm1244_vm12, %v1318_v61 }
 0x4e3   :  { %v1409_v23 = vpop.f32.mrf.mxu0 }
 0x4e4   :  { %v1410_v19 = vadd.f32 %v1409_v23, %v1333_v14 }
 0x4e5   :  { %v1411_v2 = vpop.f32.mrf.mxu0 }
 0x4e6   :  { %v1498_v3 = vmul.f32 -1.442695, %v1410_v19  ;;  %1434 = vrot.lane.b32.xlu1 %v1410_v19, %s1647_s5  ;;  %v1412_v6 = vadd.f32 %v1411_v2, %v1337_v63 }
 0x4e8   :  { %1634 = vpow2.f32 %v1498_v3 }
 0x4ea   :  { %1436 = vrot.lane.b32.xlu1 %v1412_v6, %s1647_s5 }
 0x4f5   :  { %v1635_v9 = vpop.eup %1634 }
 0x4f6   :  { %v1417_v10 = vadd.f32 1.0, %v1635_v9 }
 0x4f8   :  { %1636 = vrcp.f32 %v1417_v10 }
 0x4f9   :  { %1638 = vpow2.f32 %v1489_v15 }
 0x505   :  { %v1637_v11 = vpop.eup %1636 }
 0x506   :  { %1429 = vrot.lane.b32.xlu1 %v1637_v11, %s1647_s5  ;;  %v1639_v16 = vpop.eup %1638 }
 0x507   :  { %v1137_v7 = vadd.f32 1.0, %v1639_v16 }
 0x509   :  { %1640 = vrcp.f32 %v1137_v7 }
 0x516   :  { %v1641_v22 = vpop.eup %1640 }
 0x517   :  { %v1441_v24 = vsel %vm943_vm8, %v1975_v21, %v1641_v22 }
 0x518   :  { %v1442_v26 = vsel %vm1244_vm12, %v1441_v24, %v1422_v17 }
 0x519   :  { %v1444_v54 = vsel %vm1443_vm13, %v1442_v26, %v1426_v18 }
 0x558   :  { %v1435_v20 = vpop.permute.xlu1 %1434 }
 0x55c   :  { %v1437_v25 = vpop.permute.xlu1 %1436 }
 0x55d   :  { %v1439_v12 = vsel %vm1438_vm14, %v1435_v20, %v1437_v25 }
 0x578   :  { %v1430_v27 = vpop.permute.xlu1 %1429 }
 0x579   :  { %v1445_v28 = vsel %vm1438_vm14, %v1444_v54, %v1430_v27  ;;  %v1447_v29 = vsel %vm1446_vm15, %v1430_v27, %v1439_v12 }
 0x57a   :  { %v1449_v31 = vsel %vm1448_vm0, %v1447_v29, 0.0 }
 0x57b   :  { %v1452_v5 = vcombine.low %v1445_v28, %v1449_v31 }
 0x57d   :  { %1454 = vst [vmem:[%s2053_s7] sm:$0xff] %v1452_v5 }

</bundles_post_ra>
